<compile_context>
chip_gen: v5e
topology: v5e:2x2
jax: 0.10.0
libtpu: 0.0.40
codegen_flags: <defaults>
</compile_context>

<pallas_src>
import jax
import jax.numpy as jnp
from jax import lax
from jax.experimental import pallas as pl
from jax.experimental.pallas import tpu as pltpu


def birnn_kernel(len_ref, xf_ref, xb_ref, whf_ref, whb_ref,
                 hf_out, hb_out, hf_sc, hb_sc):
    """Grid = (batch_tiles, time_chunks). Merged fwd+bwd recurrence, two dots/step.

    len_ref : (TB, 1)       int32  valid lengths
    xf_ref  : (Tc, TB, Hp)  bf16   forward input projection, natural time order
    xb_ref  : (Tc, TB, Hp)  bf16   backward input projection, natural time order,
                                   block streamed in REVERSED chunk order
    whf_ref : (Hp, Hp)      bf16   forward recurrent weight (padded)
    whb_ref : (Hp, Hp)      bf16   backward recurrent weight (padded)
    hf_out  : (TB, Hp)      bf16   final forward hidden
    hb_out  : (TB, Hp)      bf16   final backward hidden
    hf_sc   : (TB, Hp)      bf16   forward hidden carried across time chunks
    hb_sc   : (TB, Hp)      bf16   backward hidden carried across time chunks
    """
    c = pl.program_id(1)
    n_chunks = pl.num_programs(1)
    Tc = xf_ref.shape[0]
    Tp = n_chunks * Tc                      # padded total time

    @pl.when(c == 0)
    def _():
        hf_sc[...] = jnp.zeros_like(hf_sc)
        hb_sc[...] = jnp.zeros_like(hb_sc)

    lengths = len_ref[...]                  # (TB, 1) int32
    whf = whf_ref[...]                      # hoisted: loaded once per chunk
    whb = whb_ref[...]
    t0 = c * Tc

    def step(s, carry):
        h_f, h_b = carry                    # bf16 (TB, Hp), lives in vregs
        t = t0 + s                          # global (forward) time
        x_f = xf_ref[s].astype(jnp.float32)
        x_b = xb_ref[Tc - 1 - s].astype(jnp.float32)    # global backward time Tp-1-t
        pre_f = x_f + jnp.dot(h_f, whf, preferred_element_type=jnp.float32)
        pre_b = x_b + jnp.dot(h_b, whb, preferred_element_type=jnp.float32)
        n_f = jnp.tanh(pre_f).astype(jnp.bfloat16)
        n_b = jnp.tanh(pre_b).astype(jnp.bfloat16)
        valid_f = t < lengths                            # (TB, 1)
        valid_b = (Tp - 1 - t) < lengths                 # (TB, 1)
        return (jnp.where(valid_f, n_f, h_f),
                jnp.where(valid_b, n_b, h_b))

    # Hidden state stays in the loop carry (vregs) for the whole chunk; bounded
    # unroll gives the scheduler adjacent steps without exploding program size.
    # (For very large TB*Hp the compiler will spill part of the carry to VMEM.)
    h_f, h_b = lax.fori_loop(0, Tc, step, (hf_sc[...], hb_sc[...]),
                             unroll=min(8, Tc))

    hf_sc[...] = h_f
    hb_sc[...] = h_b

    @pl.when(c == n_chunks - 1)
    def _():
        hf_out[...] = h_f
        hb_out[...] = h_b


def _pad2(w, rows, cols):
    return jnp.pad(w, ((0, rows - w.shape[0]), (0, cols - w.shape[1])))


def birnn_forward(text, text_lengths, params, *, time_chunk=None, batch_tile=None):
    """text: (T, B) int32 tokens; text_lengths: (B,) int32."""
    T, B = text.shape
    E = params["emb"].shape[1]
    H = params["wih_f"].shape[1]

    # ---------------- padded sizes (lane / sublane alignment) ----------------
    Hp = ((H + 127) // 128) * 128           # per-direction hidden, lane-dense
    Bp = ((B + 7) // 8) * 8                 # sublane multiple

    # ---------------- per-generation VMEM / core sizing ----------------
    try:
        kind = jax.devices()[0].device_kind.lower()
    except Exception:
        kind = ""
    is_v7 = ("v7" in kind) or ("7x" in kind)
    if is_v7:
        vmem_limit = 48 * 1024 * 1024       # 64 MiB physical on v7x -> stay well under
    elif ("v5" in kind) or ("v6" in kind):
        vmem_limit = 96 * 1024 * 1024       # 128 MiB physical -> bigger chunks
    else:
        vmem_limit = 48 * 1024 * 1024       # unknown chip: conservative

    # ---------------- batch tiling ----------------
    # v5e/v6e have one TensorCore: batch tiling only multiplies the serial recurrence.
    # v7x has two TCs: use exactly 2 "parallel" tiles, and only for large batches.
    if batch_tile is not None and batch_tile % 8 == 0 and Bp % batch_tile == 0:
        TB = batch_tile
    elif is_v7 and Bp >= 256 and (Bp // 2) % 8 == 0:
        TB = Bp // 2
    else:
        TB = Bp
    n_btiles = Bp // TB

    # ---------------- time chunk from VMEM budget ----------------
    # Streamed xf+xb blocks are double-buffered bf16: 2 arrays * 2 bufs * TB*Hp*2 B / step.
    stream_per_t = 2 * 2 * TB * Hp * 2
    fixed_bytes = (2 * 2 * Hp * Hp * 2        # whh_f/whh_b, double-buffered, bf16
                   + 2 * 2 * TB * Hp * 2      # two outputs, double-buffered, bf16
                   + 2 * TB * Hp * 2          # two scratch buffers, bf16
                   + 2 * TB * 4)              # lengths
    budget = int(0.6 * vmem_limit) - fixed_bytes
    tc_max = max(1, budget // stream_per_t)
    Tc = time_chunk if time_chunk is not None else tc_max
    Tc = int(max(1, min(Tc, T, tc_max)))
    n_chunks = -(-T // Tc)                    # cdiv: pad T instead of Tc=T fallback
    Tp = n_chunks * Tc

    # ---------------- wrapper-side input projection (bf16, no scatter init) ----------------
    text_p = jnp.pad(text.astype(jnp.int32), ((0, Tp - T), (0, Bp - B)))
    emb_p = params["emb"].astype(jnp.bfloat16)[text_p]              # (Tp, Bp, E) bf16

    wih_f = _pad2(params["wih_f"], E, Hp).astype(jnp.bfloat16)      # (E, Hp)
    wih_b = _pad2(params["wih_b"], E, Hp).astype(jnp.bfloat16)
    b_f = _pad2(params["b_f"], 1, Hp)                               # (1, Hp) f32
    b_b = _pad2(params["b_b"], 1, Hp)

    ef = emb_p.reshape(Tp * Bp, E)
    xf = (jnp.dot(ef, wih_f, preferred_element_type=jnp.float32) + b_f)
    xb = (jnp.dot(ef, wih_b, preferred_element_type=jnp.float32) + b_b)
    xf = xf.astype(jnp.bfloat16).reshape(Tp, Bp, Hp)                # natural time order
    xb = xb.astype(jnp.bfloat16).reshape(Tp, Bp, Hp)                # natural time order

    whh_f = _pad2(params["whh_f"], Hp, Hp).astype(jnp.bfloat16)
    whh_b = _pad2(params["whh_b"], Hp, Hp).astype(jnp.bfloat16)

    lengths_p = jnp.pad(text_lengths.astype(jnp.int32)[:, None],
                        ((0, Bp - B), (0, 0)))                      # (Bp, 1)

    grid = (n_btiles, n_chunks)

    hf, hb = pl.pallas_call(
        birnn_kernel,
        out_shape=(jax.ShapeDtypeStruct((Bp, Hp), jnp.bfloat16),
                   jax.ShapeDtypeStruct((Bp, Hp), jnp.bfloat16)),
        grid_spec=pltpu.PrefetchScalarGridSpec(
            num_scalar_prefetch=0,
            grid=grid,
            in_specs=[
                pl.BlockSpec((TB, 1), lambda b, c: (b, 0)),                        # lengths
                pl.BlockSpec((Tc, TB, Hp), lambda b, c: (c, b, 0)),                # xf stream
                pl.BlockSpec((Tc, TB, Hp),
                             lambda b, c: (n_chunks - 1 - c, b, 0)),               # xb stream (reversed chunks)
                pl.BlockSpec((Hp, Hp), lambda b, c: (0, 0)),                       # whh_f
                pl.BlockSpec((Hp, Hp), lambda b, c: (0, 0)),                       # whh_b
            ],
            out_specs=[
                pl.BlockSpec((TB, Hp), lambda b, c: (b, 0)),
                pl.BlockSpec((TB, Hp), lambda b, c: (b, 0)),
            ],
            scratch_shapes=[pltpu.VMEM((TB, Hp), jnp.bfloat16),
                            pltpu.VMEM((TB, Hp), jnp.bfloat16)],
        ),
        compiler_params=pltpu.CompilerParams(
            dimension_semantics=("parallel", "arbitrary"),
            vmem_limit_bytes=vmem_limit,
        ),
    )(lengths_p, xf, xb, whh_f, whh_b)

    # Final FC in XLA (tiny matmul): keeps double-buffered FC weights out of VMEM.
    h_f = hf[:B, :H].astype(jnp.float32)
    h_b = hb[:B, :H].astype(jnp.float32)
    return h_f @ params["wfc_f"] + h_b @ params["wfc_b"] + params["bfc"]


def birnn_reference(text, text_lengths, params):
    """Pure-JAX f32 reference with identical semantics (for validation)."""
    emb = params["emb"][text]                   # (T, B, E)
    T, B, _ = emb.shape
    H = params["wih_f"].shape[1]
    lengths = text_lengths.astype(jnp.int32)

    def run(direction_ts, wih, whh, b):
        h = jnp.zeros((B, H), jnp.float32)
        for t in direction_ts:
            h_new = jnp.tanh(emb[t] @ wih + h @ whh + b)
            mask = (t < lengths)[:, None]
            h = jnp.where(mask, h_new, h)
        return h

    h_fwd = run(range(T), params["wih_f"], params["whh_f"], params["b_f"])
    h_bwd = run(range(T - 1, -1, -1), params["wih_b"], params["whh_b"], params["b_b"])
    return h_fwd @ params["wfc_f"] + h_bwd @ params["wfc_b"] + params["bfc"]


def init_params(key, vocab_size, embedding_dim, hidden_dim, output_dim, pad_idx):
    ks = jax.random.split(key, 12)
    s = 1.0 / jnp.sqrt(hidden_dim)
    u = lambda k, shape: jax.random.uniform(k, shape, jnp.float32, -s, s)

    emb = jax.random.normal(ks[0], (vocab_size, embedding_dim), jnp.float32)
    emb = emb.at[pad_idx].set(0.0)              # padding_idx row is zero

    return {
        "emb": emb,
        # forward-direction RNN weights (stored transposed: (in, out))
        "wih_f": u(ks[1], (embedding_dim, hidden_dim)),
        "whh_f": u(ks[2], (hidden_dim, hidden_dim)),
        "b_f":   u(ks[3], (1, hidden_dim)),     # b_ih + b_hh folded together
        # backward-direction RNN weights
        "wih_b": u(ks[4], (embedding_dim, hidden_dim)),
        "whh_b": u(ks[5], (hidden_dim, hidden_dim)),
        "b_b":   u(ks[6], (1, hidden_dim)),
        # fc: Linear(2H -> O), split into forward/backward halves of the weight
        "wfc_f": u(ks[7], (hidden_dim, output_dim)),
        "wfc_b": u(ks[8], (hidden_dim, output_dim)),
        "bfc":   u(ks[9], (1, output_dim)),
    }


if __name__ == "__main__":
    VOCAB, E, H, O, PAD = 50, 32, 32, 8, 0
    T, B = 8, 4

    key = jax.random.PRNGKey(0)
    k_par, k_txt = jax.random.split(key)
    params = init_params(k_par, VOCAB, E, H, O, PAD)

    text = jax.random.randint(k_txt, (T, B), 1, VOCAB, dtype=jnp.int32)
    text_lengths = jnp.array([8, 6, 5, 3], dtype=jnp.int32)   # sorted descending
    # zero out padded positions' tokens (as pack_padded_sequence would ignore them)
    t_idx = jnp.arange(T)[:, None]
    text = jnp.where(t_idx < text_lengths[None, :], text, PAD)

    # time_chunk=4 -> grid=(1, 2): exercises the streamed/accumulator time pipeline
    out = birnn_forward(text, text_lengths, params, time_chunk=4)
    out = jax.block_until_ready(out)

    ref = birnn_reference(text, text_lengths, params)
    assert out.shape == (B, O)
    # bf16 MXU operands + bf16 carried state (f32 accumulation) -> loosened tolerance
    assert jnp.allclose(out, ref, atol=5e-2, rtol=5e-2), "mismatch vs reference"

    print("KERNEL_OK")
</pallas_src>

<mosaic_0001>
module attributes {stable_mosaic.version = 11 : i64} {
  func.func @birnn_kernel(%arg0: i32, %arg1: i32, %arg2: memref<8x1xi32, #tpu.memory_space<vmem>>, %arg3: memref<4x8x128xbf16, #tpu.memory_space<vmem>>, %arg4: memref<4x8x128xbf16, #tpu.memory_space<vmem>>, %arg5: memref<128x128xbf16, #tpu.memory_space<vmem>>, %arg6: memref<128x128xbf16, #tpu.memory_space<vmem>>, %arg7: memref<8x128xbf16, #tpu.memory_space<vmem>>, %arg8: memref<8x128xbf16, #tpu.memory_space<vmem>>, %arg9: memref<8x128xbf16, #tpu.memory_space<vmem>>, %arg10: memref<8x128xbf16, #tpu.memory_space<vmem>>) attributes {dimension_semantics = [#tpu.dimension_semantics<parallel>, #tpu.dimension_semantics<arbitrary>], iteration_bounds = array<i64: 1, 2>, scalar_prefetch = 0 : i64, scratch_operands = 2 : i64, tpu.core_type = #tpu.core_type<tc>, window_params = [{transform_indices = @transform_0, window_bounds = array<i64: 8, 1>}, {transform_indices = @transform_1, window_bounds = array<i64: 4, 8, 128>}, {transform_indices = @transform_2, window_bounds = array<i64: 4, 8, 128>}, {pipeline_mode = #tpu.pipeline_mode<synchronous>, transform_indices = @transform_3, window_bounds = array<i64: 128, 128>}, {pipeline_mode = #tpu.pipeline_mode<synchronous>, transform_indices = @transform_4, window_bounds = array<i64: 128, 128>}, {transform_indices = @transform_5, window_bounds = array<i64: 8, 128>}, {transform_indices = @transform_6, window_bounds = array<i64: 8, 128>}]} {
    %c0_i32 = arith.constant 0 : i32
    %0 = arith.cmpi eq, %arg1, %c0_i32 : i32
    %1 = arith.extui %0 : i1 to i32
    %c0_i32_0 = arith.constant 0 : i32
    %2 = arith.cmpi ne, %1, %c0_i32_0 : i32
    scf.if %2 {
      %cst_48 = arith.constant 0.000000e+00 : bf16
      %130 = vector.broadcast %cst_48 : bf16 to vector<8x128xbf16>
      %c0_49 = arith.constant 0 : index
      %c0_50 = arith.constant 0 : index
      %131 = vector.load %arg9[%c0_49, %c0_50] : memref<8x128xbf16, #tpu.memory_space<vmem>>, vector<8x128xbf16>
      tpu.vector_store %arg9[%c0_49, %c0_50], %130 {strides = array<i32>} : memref<8x128xbf16, #tpu.memory_space<vmem>>, vector<8x128xbf16>,
      %cst_51 = arith.constant 0.000000e+00 : bf16
      %132 = vector.broadcast %cst_51 : bf16 to vector<8x128xbf16>
      %c0_52 = arith.constant 0 : index
      %c0_53 = arith.constant 0 : index
      %133 = vector.load %arg10[%c0_52, %c0_53] : memref<8x128xbf16, #tpu.memory_space<vmem>>, vector<8x128xbf16>
      tpu.vector_store %arg10[%c0_52, %c0_53], %132 {strides = array<i32>} : memref<8x128xbf16, #tpu.memory_space<vmem>>, vector<8x128xbf16>,
    } else {
    }
    %c0 = arith.constant 0 : index
    %c0_1 = arith.constant 0 : index
    %3 = vector.load %arg2[%c0, %c0_1] : memref<8x1xi32, #tpu.memory_space<vmem>>, vector<8x1xi32>
    %c0_2 = arith.constant 0 : index
    %c0_3 = arith.constant 0 : index
    %4 = vector.load %arg5[%c0_2, %c0_3] : memref<128x128xbf16, #tpu.memory_space<vmem>>, vector<128x128xbf16>
    %c0_4 = arith.constant 0 : index
    %c0_5 = arith.constant 0 : index
    %5 = vector.load %arg6[%c0_4, %c0_5] : memref<128x128xbf16, #tpu.memory_space<vmem>>, vector<128x128xbf16>
    %c4_i32 = arith.constant 4 : i32
    %6 = arith.muli %arg1, %c4_i32 : i32
    %c0_6 = arith.constant 0 : index
    %c0_7 = arith.constant 0 : index
    %7 = vector.load %arg9[%c0_6, %c0_7] : memref<8x128xbf16, #tpu.memory_space<vmem>>, vector<8x128xbf16>
    %c0_8 = arith.constant 0 : index
    %c0_9 = arith.constant 0 : index
    %8 = vector.load %arg10[%c0_8, %c0_9] : memref<8x128xbf16, #tpu.memory_space<vmem>>, vector<8x128xbf16>
    %c0_i32_10 = arith.constant 0 : i32
    %9 = arith.addi %6, %c0_i32_10 : i32
    %10 = arith.index_cast %c0_i32_10 : i32 to index
    %c0_11 = arith.constant 0 : index
    %c0_12 = arith.constant 0 : index
    %11 = vector.load %arg3[%10, %c0_11, %c0_12] : memref<4x8x128xbf16, #tpu.memory_space<vmem>>, vector<1x8x128xbf16>
    %12 = vector.shape_cast %11 : vector<1x8x128xbf16> to vector<8x128xbf16>
    %13 = arith.extf %12 : vector<8x128xbf16> to vector<8x128xf32>
    %c3_i32 = arith.constant 3 : i32
    %14 = arith.subi %c3_i32, %c0_i32_10 : i32
    %15 = arith.index_cast %14 : i32 to index
    %c0_13 = arith.constant 0 : index
    %c0_14 = arith.constant 0 : index
    %16 = vector.load %arg4[%15, %c0_13, %c0_14] : memref<4x8x128xbf16, #tpu.memory_space<vmem>>, vector<1x8x128xbf16>
    %17 = vector.shape_cast %16 : vector<1x8x128xbf16> to vector<8x128xbf16>
    %18 = arith.extf %17 : vector<8x128xbf16> to vector<8x128xf32>
    %cst = arith.constant dense<0.000000e+00> : vector<8x128xf32>
    %19 = tpu.matmul %7, %4, %cst {dimension_numbers = #tpu.dot_dimension_numbers<[1], [0], [0], [1], [0, 0, 1, 1], [], []>} : vector<8x128xbf16>, vector<128x128xbf16>, vector<8x128xf32> -> vector<8x128xf32>
    %20 = arith.addf %13, %19 : vector<8x128xf32>
    %cst_15 = arith.constant dense<0.000000e+00> : vector<8x128xf32>
    %21 = tpu.matmul %8, %5, %cst_15 {dimension_numbers = #tpu.dot_dimension_numbers<[1], [0], [0], [1], [0, 0, 1, 1], [], []>} : vector<8x128xbf16>, vector<128x128xbf16>, vector<8x128xf32> -> vector<8x128xf32>
    %22 = arith.addf %18, %21 : vector<8x128xf32>
    %23 = math.tanh %20 : vector<8x128xf32>
    %24 = arith.truncf %23 : vector<8x128xf32> to vector<8x128xbf16>
    %25 = math.tanh %22 : vector<8x128xf32>
    %26 = arith.truncf %25 : vector<8x128xf32> to vector<8x128xbf16>
    %27 = vector.broadcast %9 : i32 to vector<8x1xi32>
    %28 = arith.cmpi slt, %27, %3 : vector<8x1xi32>
    %c7_i32 = arith.constant 7 : i32
    %29 = arith.subi %c7_i32, %9 : i32
    %30 = vector.broadcast %29 : i32 to vector<8x1xi32>
    %31 = arith.cmpi slt, %30, %3 : vector<8x1xi32>
    %32 = vector.shape_cast %28 : vector<8x1xi1> to vector<8x1xi1>
    %33 = vector.broadcast %32 : vector<8x1xi1> to vector<8x128xi1>
    %34 = arith.select %33, %24, %7 : vector<8x128xi1>, vector<8x128xbf16>
    %35 = vector.shape_cast %31 : vector<8x1xi1> to vector<8x1xi1>
    %36 = vector.broadcast %35 : vector<8x1xi1> to vector<8x128xi1>
    %37 = arith.select %36, %26, %8 : vector<8x128xi1>, vector<8x128xbf16>
    %c1_i32 = arith.constant 1 : i32
    %38 = arith.addi %6, %c1_i32 : i32
    %39 = arith.index_cast %c1_i32 : i32 to index
    %c0_16 = arith.constant 0 : index
    %c0_17 = arith.constant 0 : index
    %40 = vector.load %arg3[%39, %c0_16, %c0_17] : memref<4x8x128xbf16, #tpu.memory_space<vmem>>, vector<1x8x128xbf16>
    %41 = vector.shape_cast %40 : vector<1x8x128xbf16> to vector<8x128xbf16>
    %42 = arith.extf %41 : vector<8x128xbf16> to vector<8x128xf32>
    %c3_i32_18 = arith.constant 3 : i32
    %43 = arith.subi %c3_i32_18, %c1_i32 : i32
    %44 = arith.index_cast %43 : i32 to index
    %c0_19 = arith.constant 0 : index
    %c0_20 = arith.constant 0 : index
    %45 = vector.load %arg4[%44, %c0_19, %c0_20] : memref<4x8x128xbf16, #tpu.memory_space<vmem>>, vector<1x8x128xbf16>
    %46 = vector.shape_cast %45 : vector<1x8x128xbf16> to vector<8x128xbf16>
    %47 = arith.extf %46 : vector<8x128xbf16> to vector<8x128xf32>
    %cst_21 = arith.constant dense<0.000000e+00> : vector<8x128xf32>
    %48 = tpu.matmul %34, %4, %cst_21 {dimension_numbers = #tpu.dot_dimension_numbers<[1], [0], [0], [1], [0, 0, 1, 1], [], []>} : vector<8x128xbf16>, vector<128x128xbf16>, vector<8x128xf32> -> vector<8x128xf32>
    %49 = arith.addf %42, %48 : vector<8x128xf32>
    %cst_22 = arith.constant dense<0.000000e+00> : vector<8x128xf32>
    %50 = tpu.matmul %37, %5, %cst_22 {dimension_numbers = #tpu.dot_dimension_numbers<[1], [0], [0], [1], [0, 0, 1, 1], [], []>} : vector<8x128xbf16>, vector<128x128xbf16>, vector<8x128xf32> -> vector<8x128xf32>
    %51 = arith.addf %47, %50 : vector<8x128xf32>
    %52 = math.tanh %49 : vector<8x128xf32>
    %53 = arith.truncf %52 : vector<8x128xf32> to vector<8x128xbf16>
    %54 = math.tanh %51 : vector<8x128xf32>
    %55 = arith.truncf %54 : vector<8x128xf32> to vector<8x128xbf16>
    %56 = vector.broadcast %38 : i32 to vector<8x1xi32>
    %57 = arith.cmpi slt, %56, %3 : vector<8x1xi32>
    %c7_i32_23 = arith.constant 7 : i32
    %58 = arith.subi %c7_i32_23, %38 : i32
    %59 = vector.broadcast %58 : i32 to vector<8x1xi32>
    %60 = arith.cmpi slt, %59, %3 : vector<8x1xi32>
    %61 = vector.shape_cast %57 : vector<8x1xi1> to vector<8x1xi1>
    %62 = vector.broadcast %61 : vector<8x1xi1> to vector<8x128xi1>
    %63 = arith.select %62, %53, %34 : vector<8x128xi1>, vector<8x128xbf16>
    %64 = vector.shape_cast %60 : vector<8x1xi1> to vector<8x1xi1>
    %65 = vector.broadcast %64 : vector<8x1xi1> to vector<8x128xi1>
    %66 = arith.select %65, %55, %37 : vector<8x128xi1>, vector<8x128xbf16>
    %c2_i32 = arith.constant 2 : i32
    %67 = arith.addi %6, %c2_i32 : i32
    %68 = arith.index_cast %c2_i32 : i32 to index
    %c0_24 = arith.constant 0 : index
    %c0_25 = arith.constant 0 : index
    %69 = vector.load %arg3[%68, %c0_24, %c0_25] : memref<4x8x128xbf16, #tpu.memory_space<vmem>>, vector<1x8x128xbf16>
    %70 = vector.shape_cast %69 : vector<1x8x128xbf16> to vector<8x128xbf16>
    %71 = arith.extf %70 : vector<8x128xbf16> to vector<8x128xf32>
    %c3_i32_26 = arith.constant 3 : i32
    %72 = arith.subi %c3_i32_26, %c2_i32 : i32
    %73 = arith.index_cast %72 : i32 to index
    %c0_27 = arith.constant 0 : index
    %c0_28 = arith.constant 0 : index
    %74 = vector.load %arg4[%73, %c0_27, %c0_28] : memref<4x8x128xbf16, #tpu.memory_space<vmem>>, vector<1x8x128xbf16>
    %75 = vector.shape_cast %74 : vector<1x8x128xbf16> to vector<8x128xbf16>
    %76 = arith.extf %75 : vector<8x128xbf16> to vector<8x128xf32>
    %cst_29 = arith.constant dense<0.000000e+00> : vector<8x128xf32>
    %77 = tpu.matmul %63, %4, %cst_29 {dimension_numbers = #tpu.dot_dimension_numbers<[1], [0], [0], [1], [0, 0, 1, 1], [], []>} : vector<8x128xbf16>, vector<128x128xbf16>, vector<8x128xf32> -> vector<8x128xf32>
    %78 = arith.addf %71, %77 : vector<8x128xf32>
    %cst_30 = arith.constant dense<0.000000e+00> : vector<8x128xf32>
    %79 = tpu.matmul %66, %5, %cst_30 {dimension_numbers = #tpu.dot_dimension_numbers<[1], [0], [0], [1], [0, 0, 1, 1], [], []>} : vector<8x128xbf16>, vector<128x128xbf16>, vector<8x128xf32> -> vector<8x128xf32>
    %80 = arith.addf %76, %79 : vector<8x128xf32>
    %81 = math.tanh %78 : vector<8x128xf32>
    %82 = arith.truncf %81 : vector<8x128xf32> to vector<8x128xbf16>
    %83 = math.tanh %80 : vector<8x128xf32>
    %84 = arith.truncf %83 : vector<8x128xf32> to vector<8x128xbf16>
    %85 = vector.broadcast %67 : i32 to vector<8x1xi32>
    %86 = arith.cmpi slt, %85, %3 : vector<8x1xi32>
    %c7_i32_31 = arith.constant 7 : i32
    %87 = arith.subi %c7_i32_31, %67 : i32
    %88 = vector.broadcast %87 : i32 to vector<8x1xi32>
    %89 = arith.cmpi slt, %88, %3 : vector<8x1xi32>
    %90 = vector.shape_cast %86 : vector<8x1xi1> to vector<8x1xi1>
    %91 = vector.broadcast %90 : vector<8x1xi1> to vector<8x128xi1>
    %92 = arith.select %91, %82, %63 : vector<8x128xi1>, vector<8x128xbf16>
    %93 = vector.shape_cast %89 : vector<8x1xi1> to vector<8x1xi1>
    %94 = vector.broadcast %93 : vector<8x1xi1> to vector<8x128xi1>
    %95 = arith.select %94, %84, %66 : vector<8x128xi1>, vector<8x128xbf16>
    %c3_i32_32 = arith.constant 3 : i32
    %96 = arith.addi %6, %c3_i32_32 : i32
    %97 = arith.index_cast %c3_i32_32 : i32 to index
    %c0_33 = arith.constant 0 : index
    %c0_34 = arith.constant 0 : index
    %98 = vector.load %arg3[%97, %c0_33, %c0_34] : memref<4x8x128xbf16, #tpu.memory_space<vmem>>, vector<1x8x128xbf16>
    %99 = vector.shape_cast %98 : vector<1x8x128xbf16> to vector<8x128xbf16>
    %100 = arith.extf %99 : vector<8x128xbf16> to vector<8x128xf32>
    %c3_i32_35 = arith.constant 3 : i32
    %101 = arith.subi %c3_i32_35, %c3_i32_32 : i32
    %102 = arith.index_cast %101 : i32 to index
    %c0_36 = arith.constant 0 : index
    %c0_37 = arith.constant 0 : index
    %103 = vector.load %arg4[%102, %c0_36, %c0_37] : memref<4x8x128xbf16, #tpu.memory_space<vmem>>, vector<1x8x128xbf16>
    %104 = vector.shape_cast %103 : vector<1x8x128xbf16> to vector<8x128xbf16>
    %105 = arith.extf %104 : vector<8x128xbf16> to vector<8x128xf32>
    %cst_38 = arith.constant dense<0.000000e+00> : vector<8x128xf32>
    %106 = tpu.matmul %92, %4, %cst_38 {dimension_numbers = #tpu.dot_dimension_numbers<[1], [0], [0], [1], [0, 0, 1, 1], [], []>} : vector<8x128xbf16>, vector<128x128xbf16>, vector<8x128xf32> -> vector<8x128xf32>
    %107 = arith.addf %100, %106 : vector<8x128xf32>
    %cst_39 = arith.constant dense<0.000000e+00> : vector<8x128xf32>
    %108 = tpu.matmul %95, %5, %cst_39 {dimension_numbers = #tpu.dot_dimension_numbers<[1], [0], [0], [1], [0, 0, 1, 1], [], []>} : vector<8x128xbf16>, vector<128x128xbf16>, vector<8x128xf32> -> vector<8x128xf32>
    %109 = arith.addf %105, %108 : vector<8x128xf32>
    %110 = math.tanh %107 : vector<8x128xf32>
    %111 = arith.truncf %110 : vector<8x128xf32> to vector<8x128xbf16>
    %112 = math.tanh %109 : vector<8x128xf32>
    %113 = arith.truncf %112 : vector<8x128xf32> to vector<8x128xbf16>
    %114 = vector.broadcast %96 : i32 to vector<8x1xi32>
    %115 = arith.cmpi slt, %114, %3 : vector<8x1xi32>
    %c7_i32_40 = arith.constant 7 : i32
    %116 = arith.subi %c7_i32_40, %96 : i32
    %117 = vector.broadcast %116 : i32 to vector<8x1xi32>
    %118 = arith.cmpi slt, %117, %3 : vector<8x1xi32>
    %119 = vector.shape_cast %115 : vector<8x1xi1> to vector<8x1xi1>
    %120 = vector.broadcast %119 : vector<8x1xi1> to vector<8x128xi1>
    %121 = arith.select %120, %111, %92 : vector<8x128xi1>, vector<8x128xbf16>
    %122 = vector.shape_cast %118 : vector<8x1xi1> to vector<8x1xi1>
    %123 = vector.broadcast %122 : vector<8x1xi1> to vector<8x128xi1>
    %124 = arith.select %123, %113, %95 : vector<8x128xi1>, vector<8x128xbf16>
    %c4_i32_41 = arith.constant 4 : i32
    %c0_42 = arith.constant 0 : index
    %c0_43 = arith.constant 0 : index
    %125 = vector.load %arg9[%c0_42, %c0_43] : memref<8x128xbf16, #tpu.memory_space<vmem>>, vector<8x128xbf16>
    tpu.vector_store %arg9[%c0_42, %c0_43], %121 {strides = array<i32>} : memref<8x128xbf16, #tpu.memory_space<vmem>>, vector<8x128xbf16>,
    %c0_44 = arith.constant 0 : index
    %c0_45 = arith.constant 0 : index
    %126 = vector.load %arg10[%c0_44, %c0_45] : memref<8x128xbf16, #tpu.memory_space<vmem>>, vector<8x128xbf16>
    tpu.vector_store %arg10[%c0_44, %c0_45], %124 {strides = array<i32>} : memref<8x128xbf16, #tpu.memory_space<vmem>>, vector<8x128xbf16>,
    %c1_i32_46 = arith.constant 1 : i32
    %127 = arith.cmpi eq, %arg1, %c1_i32_46 : i32
    %128 = arith.extui %127 : i1 to i32
    %c0_i32_47 = arith.constant 0 : i32
    %129 = arith.cmpi ne, %128, %c0_i32_47 : i32
    scf.if %129 {
      %c0_48 = arith.constant 0 : index
      %c0_49 = arith.constant 0 : index
      %130 = vector.load %arg7[%c0_48, %c0_49] : memref<8x128xbf16, #tpu.memory_space<vmem>>, vector<8x128xbf16>
      tpu.vector_store %arg7[%c0_48, %c0_49], %121 {strides = array<i32>} : memref<8x128xbf16, #tpu.memory_space<vmem>>, vector<8x128xbf16>,
      %c0_50 = arith.constant 0 : index
      %c0_51 = arith.constant 0 : index
      %131 = vector.load %arg8[%c0_50, %c0_51] : memref<8x128xbf16, #tpu.memory_space<vmem>>, vector<8x128xbf16>
      tpu.vector_store %arg8[%c0_50, %c0_51], %124 {strides = array<i32>} : memref<8x128xbf16, #tpu.memory_space<vmem>>, vector<8x128xbf16>,
    } else {
    }
    return
  }
  func.func @transform_0(%arg0: i32, %arg1: i32) -> (i32, i32) {
    %c0_i32 = arith.constant 0 : i32
    %c0_i32_0 = arith.constant 0 : i32
    return %arg0, %c0_i32 : i32, i32
  }
  func.func @transform_1(%arg0: i32, %arg1: i32) -> (i32, i32, i32) {
    %c0_i32 = arith.constant 0 : i32
    %c0_i32_0 = arith.constant 0 : i32
    return %arg1, %arg0, %c0_i32 : i32, i32, i32
  }
  func.func @transform_2(%arg0: i32, %arg1: i32) -> (i32, i32, i32) {
    %c1_i32 = arith.constant 1 : i32
    %0 = arith.subi %c1_i32, %arg1 : i32
    %c0_i32 = arith.constant 0 : i32
    %c0_i32_0 = arith.constant 0 : i32
    return %0, %arg0, %c0_i32 : i32, i32, i32
  }
  func.func @transform_3(%arg0: i32, %arg1: i32) -> (i32, i32) {
    %c0_i32 = arith.constant 0 : i32
    %c0_i32_0 = arith.constant 0 : i32
    %c0_i32_1 = arith.constant 0 : i32
    return %c0_i32, %c0_i32_0 : i32, i32
  }
  func.func @transform_4(%arg0: i32, %arg1: i32) -> (i32, i32) {
    %c0_i32 = arith.constant 0 : i32
    %c0_i32_0 = arith.constant 0 : i32
    %c0_i32_1 = arith.constant 0 : i32
    return %c0_i32, %c0_i32_0 : i32, i32
  }
  func.func @transform_5(%arg0: i32, %arg1: i32) -> (i32, i32) {
    %c0_i32 = arith.constant 0 : i32
    %c0_i32_0 = arith.constant 0 : i32
    return %arg0, %c0_i32 : i32, i32
  }
  func.func @transform_6(%arg0: i32, %arg1: i32) -> (i32, i32) {
    %c0_i32 = arith.constant 0 : i32
    %c0_i32_0 = arith.constant 0 : i32
    return %arg0, %c0_i32 : i32, i32
  }
}

</mosaic_0001>

<bundles_post_ra>
// kernel: tpu_custom_call.1
= control target key start
LH: loop header
LB: loop body
LE: loop exit
PB: predicated region body
PF: predicated region fallthrough
CT: control target
= control target key end

     0   :  { %s1778_s0 = inlined_call_operand.vmem [shape: s32[8,1], index: 0, kind: input, shape index: {}]   ;;  %s1779_s1 = inlined_call_operand.hbm [shape: bf16[8,8,128], index: 1, kind: input, shape index: {}]   ;;  %s1780_s2 = inlined_call_operand.hbm [shape: bf16[8,8,128], index: 2, kind: input, shape index: {}]   ;;  %s1781_s3 = inlined_call_operand.hbm [shape: bf16[128,128], index: 3, kind: input, shape index: {}]   ;;  %s1782_s4 = inlined_call_operand.hbm [shape: bf16[128,128], index: 4, kind: input, shape index: {}]   ;;  %s1783_s5 = inlined_call_operand.hbm [shape: bf16[8,128], index: 5, kind: output, shape index: {0}]   ;;  %s1784_s6 = inlined_call_operand.hbm [shape: bf16[8,128], index: 6, kind: output, shape index: {1}]  }
   0x1   :  { %1791 = sst [smem:[#allocation24_spill]] %s1779_s1 }
   0x2   :  { %1792 = sst [smem:[#allocation25_spill]] %s1781_s3 }
   0x3   :  { %1793 = sst [smem:[#allocation26_spill]] %s1782_s4 }
   0x4   :  { %1794 = sst [smem:[#allocation27_spill]] %s1784_s6 }
   0x5   :  { %12 = vsyncpa [#allocation5], 0 }
   0x6   :  { %14 = vsyncpa [#allocation5 + $0x1], 0 }
   0x7   :  { %15 = vsyncpa [#allocation8], 0 }
   0x8   :  { %17 = vsyncpa [#allocation8 + $0x1], 0 }
   0x9   :  { %18 = vsyncpa [#allocation11], 0 }
   0xa   :  { %19 = vsyncpa [#allocation6], 0 }
   0xb   :  { %20 = vsyncpa [#allocation14], 0  ;;  %s1493_s21 = smov 0   ;;  %s1495_s22 = smov 0  }
   0xc   :  { %s1497_s23 = smov 0   ;;  %s1499_s24 = smov 0  }
   0xd   :  { %s1501_s25 = smov 0   ;;  %s1503_s26 = smov 0  }
   0xe   :  { %s1505_s27 = smov 0   ;;  %s1507_s28 = smov 0  }
   0xf   :  { %s1509_s29 = smov 0  }
  0x10 LB: > { %1795 = sst [smem:[#allocation21_spill]] %s1436_s26  ;;  %s1537_s30 = sadd.s32 4294967295, %s1448_s29   ;;  %s1448_s29 = sphi %s1509_s29, %s26_s29   ;;  %s1444_s28 = sphi %s1507_s28, %s1817_s28   ;;  %s1440_s27 = sphi %s1505_s27, %s1810_s27   ;;  %s1436_s26 = sphi %s1503_s26, %s1809_s26   ;;  %s1432_s25 = sphi %s1501_s25, %s1816_s25   ;;  %s1428_s24 = sphi %s1499_s24, %s1815_s24   ;;  %s1424_s23 = sphi %s1497_s23, %s1814_s23   ;;  %s1420_s22 = sphi %s1495_s22, %s1813_s22   ;;  %s1416_s21 = sphi %s1493_s21, %s1812_s21  }
  0x11   : > { %1796 = sst [smem:[#allocation22_spill]] %s1444_s28  ;;  %p116_p0 = scmp.ne.s32.totalorder %s1420_s22, %s1416_s21 }
  0x12   : > { %p87_p1 = scmp.eq.s32.totalorder %s1537_s30, 0  ;;  %p923_p2 = scmp.ge.s32.totalorder %s1448_s29, 1 }
  0x13   : > { %p221_p3 = scmp.lt.s32.totalorder %s1448_s29, 3  ;;  %s1798_s3 = sld [smem:[#allocation25_spill]] }
  0x14   : > { %p1545_p4 = por %p116_p0, %p87_p1  ;;  %s1450_s12 = smov [#allocation9]  }
  0x15   : > { %p1552_p5 = pnand %p923_p2, %p221_p3  ;;  %s241_s13 = sshll.u32 %s1450_s12, 4  ;;  %s242_s13 = int_to_ptr.vmem [resolvable:$true] %s241_s13 }
  0x16   : > { %s1800_s4 = sld [smem:[#allocation26_spill]]  ;;  %s1785_s17 = smov 64  }
  0x17   : > { %p1056_p6 = pneg %p1552_p5  ;;  %s1787_s18 = smov 4  }
  0x18   : > { %s1453_s19 = smov [#allocation10]   ;;  %s35_s21 = sadd.s32 1, %s1444_s28 }
  0x19   : > { %s239_s10 = sshll.u32 %s1798_s3, 4  ;;  %p1057_p7 = pnand %p1056_p6, %p87_p1  ;;  %s240_s10 = int_to_ptr.hbm [resolvable:$true] %s239_s10 }
  0x1a   : > { %s255_s20 = sshll.u32 %s1453_s19, 4  ;;  %s73_s8 = sadd.s32 1, %s1436_s26  ;;  %s256_s20 = int_to_ptr.vmem [resolvable:$true] %s255_s20 }
  0x1b   : > { %1059 = dma.hbm_to_vmem [thread:$0]  (!%p1057_p7), %s240_s10, 1024, %s242_s13, [#allocation8], %s1785_s17, %s1785_s17, %s1787_s18  }
  0x1c   : > { %s253_s16 = sshll.u32 %s1800_s4, 4  ;;  %p36_p8 = scmp.ge.s32.totalorder %s35_s21, 2  ;;  %s254_s16 = int_to_ptr.hbm [resolvable:$true] %s253_s16 }
  0x1d   : > { %1062 = dma.hbm_to_vmem [thread:$0]  (!%p1057_p7), %s254_s16, 1024, %s256_s20, [#allocation11], %s1785_s17, %s1785_s17, %s1787_s18  }
  0x1e   : > { %p80_p9 = scmp.ne.s32.totalorder %s1436_s26, %s1432_s25  ;;  %p81_p10 = scmp.eq.s32.totalorder %s1448_s29, 0 }
  0x1f   : > { %p86_p11 = scmp.ne.s32.totalorder %s1432_s25, %s1428_s24  ;;  %s1819_s21 = smov (%p36_p8, %s35_s21), 0 }
  0x20   : > { %p1580_p12 = por %p81_p10, %p80_p9  ;;  %s68_s12 = ssub.s32 %s1444_s28, %s1819_s21 }
  0x21   : > { %p1586_p13 = por %p87_p1, %p86_p11  ;;  %p1072_p0 = scmp.lt.s32.totalorder %s1448_s29, 2 }
  0x22   : > { %p71_p2 = scmp.eq.s32.totalorder %s68_s12, 0  ;;  %s269_s24 = sand.u32 1, %s1436_s26  }
  0x23   : > { %s928_s13 = sshll.u32 %s269_s24, 4  ;;  %s1018_s15 = sshll.u32 %s1444_s28, 4 }
  0x24   : > { %s1595_s14 = scalar_select %p71_p2, %s1436_s26, %s73_s8  }
  0x25   : > { %s1804_s1 = sld [smem:[#allocation24_spill]]  ;;  %s273_s17 = scalar_lea.vmem [#allocation4], %s928_s13 }
  0x26   : > { %1803 = sst [smem:[#allocation23_spill]] %s1595_s14  ;;  %s282_s18 = sshll.u32 %s273_s17, 4  ;;  %s283_s18 = int_to_ptr.vmem [resolvable:$true] %s282_s18 }
  0x27   : > { %p1064_p3 = pnand %p1072_p0, %p1580_p12  ;;  %s96_s12 = ssub.s32 1, %s1444_s28 }
  0x28   : > { %s270_s8 = scalar_lea.sflag [#allocation5], %s269_s24  ;;  %s1805_s4 = smov 4  }
  0x29   : > { %s1806_s14 = smov 64   ;;  %s97_s16 = ssub.s32 1, %s1819_s21 }
  0x2a   : > { %s103_s19 = sadd.s32 1, %s1424_s23  ;;  %p110_p6 = scmp.ne.s32.totalorder %s1424_s23, %s1420_s22 }
  0x2b   : > { %s279_s20 = scalar_lea.hbm %s1804_s1, %s1018_s15  ;;  %s98_s15 = ssub.s32 %s96_s12, %s97_s16 }
  0x2c   : > { %s280_s3 = sshll.u32 %s279_s20, 4  ;;  %p101_p7 = scmp.eq.s32.totalorder %s98_s15, 0  ;;  %s281_s3 = int_to_ptr.hbm [resolvable:$true] %s280_s3 }
  0x2d   : > { %1066 = dma.hbm_to_vmem [thread:$0]  (!%p1064_p3), %s281_s3, 256, %s283_s18, %s270_s8, %s1806_s14, %s1806_s14, %s1805_s4  }
  0x2e   : > { %s292_s17 = sand.u32 1, %s1448_s29   ;;  %p112_p8 = por %p110_p6, %p81_p10 }
  0x2f   : > { %s1617_s13 = scalar_select %p101_p7, %s1424_s23, %s103_s19  }
  0x30   : > { %s294_s9 = sand.u32 1, %s1424_s23   ;;  %s1019_s20 = sshll.u32 %s96_s12, 4 }
  0x31   : > { %s931_s1 = sshll.u32 %s294_s9, 4  ;;  %s303_s26 = scalar_lea.hbm %s1780_s2, %s1019_s20 }
  0x32   : > { %s304_s6 = sshll.u32 %s303_s26, 4  ;;  %s296_s3 = scalar_lea.vmem [#allocation7], %s931_s1  ;;  %s305_s6 = int_to_ptr.hbm [resolvable:$true] %s304_s6 }
  0x33   : > { %s306_s18 = sshll.u32 %s296_s3, 4  ;;  %p1067_p9 = pnand %p1072_p0, %p112_p8  ;;  %s307_s18 = int_to_ptr.vmem [resolvable:$true] %s306_s18 }
  0x34   : > { %s293_s8 = scalar_lea.sflag [#allocation8], %s292_s17  ;;  %318 = sbr.rel (%p1552_p5) target bundleno = 693 (0x2b5), region = 40 }
  0x35   : > { %1069 = dma.hbm_to_vmem [thread:$0]  (!%p1067_p9), %s305_s6, 256, %s307_s18, %s293_s8, %s1806_s14, %s1806_s14, %s1805_s4  }
  0x36   : > { %s320_s12 = sand.u32 (!%p1552_p5), 1, %s1432_s25  }
  0x37   : > { %s1631_s28 = sshll.u32 (!%p1552_p5), %s320_s12, 4  ;;  %s321_s26 = scalar_lea.sflag (!%p1552_p5), [#allocation5], %s320_s12 }
  0x38   : > { %s324_s1 = scalar_lea.vmem (!%p1552_p5), [#allocation4], %s1631_s28 }
  0x39   : > { %1391 = dma.done.wait (%p1586_p13), %s321_s26, 256  }
  0x3a   : > { %1393 = vsyncadd (%p1586_p13), %s321_s26, 4294967040  ;;  %s330_s4 = sand.u32 1, %s1537_s30   ;;  %s332_s6 = sand.u32 1, %s1420_s22  }
  0x3b   : > { %s1640_s11 = sshll.u32 %s332_s6, 4  ;;  %s331_s14 = scalar_lea.sflag [#allocation8], %s330_s4 }
  0x3c   : > { %s334_s16 = scalar_lea.vmem [#allocation7], %s1640_s11 }
  0x3d   : > { %1395 = dma.done.wait (%p1545_p4), %s331_s14, 256  }
  0x3e   : > { %1397 = vsyncadd (%p1545_p4), %s331_s14, 4294967040 }
  0x3f   : > { %1399 = dma.done.wait (%p87_p1), [#allocation8], 1024  }
  0x40   : > { %1401 = vsyncadd (%p87_p1), [#allocation8], 4294966272 }
  0x41   : > { %1403 = dma.done.wait (%p87_p1), [#allocation11], 1024  }
  0x42   : > { %1405 = vsyncadd (%p87_p1), [#allocation11], 4294966272  ;;  %p939_p5 = scmp.ne.s32.totalorder %s1440_s27, 0 }
  0x44   : > { %389 = sbr.rel (%p939_p5) target bundleno = 76 (0x4c), region = 60 }
  0x49   : > { %v1454_v0 = vmov 0  }
  0x4a   : > { %390 = vst [vmem:[#allocation2] sm:$0xf] %v1454_v0 }
  0x4b   : > { %391 = vst [vmem:[#allocation3] sm:$0xf] %v1454_v0 }
  0x4c PF: > { %v1656_v1 = vld [vmem:[#allocation9 + $0x38] sm:$0xff]  ;;  %s1661_s7 = sshll.u32 %s1440_s27, 2  ;;  %v1455_v3 = vmov 0   ;;  %v1667_v4 = vld [vmem:[#allocation9 + $0x30] sm:$0xff]  ;;  %v1025_v8 = vld [vmem:[#allocation9 + $0x28] sm:$0xff]  ;;  %p1011_p1 = scmp.ne.s32.totalorder %s1440_s27, 1 }
  0x4d   : > { %v1658_v2 = vld [vmem:[#allocation10 + $0x38] sm:$0xff]  ;;  %1159 = vset.pattern.permute.xlu0 %v1455_v3  ;;  %1160 = vset.pattern.permute.xlu1 %v1455_v3  ;;  %v1669_v5 = vld [vmem:[#allocation10 + $0x30] sm:$0xff]  ;;  %v561_v6 = vstv %s1661_s7  ;;  %s563_s10 = ssub.s32 7, %s1661_s7  ;;  %v1033_v9 = vld [vmem:[#allocation10 + $0x28] sm:$0xff]  ;;  %s696_s17 = sadd.s32 3, %s1661_s7 }
  0x4e   : > { %481 = vmatpush.bf16.msra.mxu0 %v1656_v1  ;;  %543 = vmatpush.bf16.msra.mxu1 %v1658_v2  ;;  %v1678_v7 = vld [vmem:[%s1778_s0] sm:$0xff]  ;;  %v564_v11 = vstv %s563_s10  ;;  %v1024_v12 = vld [vmem:[#allocation9 + $0x20] sm:$0xff]  ;;  %v734_v17 = vstv %s696_s17  ;;  %v1022_v18 = vld [vmem:[#allocation9 + $0x10] sm:$0xff]  ;;  %s580_s9 = sadd.s32 1, %s1661_s7  ;;  %s621_s20 = ssub.s32 6, %s1661_s7 }
  0x4f   : > { %587 = vmatpush.bf16.msra.mxu2 %v1656_v1  ;;  %601 = vmatpush.bf16.msra.mxu3 %v1658_v2  ;;  %vm562_vm0 = vcmp.lt.s32.totalorder %v561_v6, %v1678_v7  ;;  %vm565_vm1 = vcmp.lt.s32.totalorder %v564_v11, %v1678_v7  ;;  %v1032_v13 = vld [vmem:[#allocation10 + $0x20] sm:$0xff]  ;;  %v1023_v15 = vld [vmem:[#allocation9 + $0x18] sm:$0xff]  ;;  %vm735_vm2 = vcmp.lt.s32.totalorder %v734_v17, %v1678_v7  ;;  %v1030_v19 = vld [vmem:[#allocation10 + $0x10] sm:$0xff]  ;;  %v619_v27 = vstv %s580_s9  ;;  %s736_s24 = ssub.s32 4, %s1661_s7  ;;  %s638_s3 = sadd.s32 2, %s1661_s7 }
  0x50   : > { %1161 = vset.pattern.permute.xlu2 %v1455_v3  ;;  %v566_v10 = vsel %vm562_vm0, 1, %v1455_v3  ;;  %v573_v14 = vsel %vm565_vm1, 1, %v1455_v3  ;;  %v1031_v16 = vld [vmem:[#allocation10 + $0x18] sm:$0xff]  ;;  %v739_v20 = vsel %vm735_vm2, 1, %v1455_v3  ;;  %v1021_v21 = vld [vmem:[#allocation9 + $0x8] sm:$0xff]  ;;  %v1020_v23 = vld [vmem:[#allocation9] sm:$0xff]  ;;  %vm620_vm3 = vcmp.lt.s32.totalorder %v619_v27, %v1678_v7 }
  0x51   : > { %568 = vperm.xlu0 %1159, %v566_v10   ;;  %v1029_v22 = vld [vmem:[#allocation10 + $0x8] sm:$0xff]  ;;  %v1028_v24 = vld [vmem:[#allocation10] sm:$0xff]  ;;  %v1692_v25 = vld [vmem:[#allocation2] sm:$0xf]  ;;  %v624_v28 = vsel %vm620_vm3, 1, %v1455_v3  ;;  %v622_v29 = vstv %s621_s20  ;;  %v737_v31 = vstv %s736_s24  ;;  %s679_s18 = ssub.s32 5, %s1661_s7  ;;  %v677_v51 = vstv %s638_s3 }
  0x52   : > { %482 = vmatpush.bf16.msra.mxu0 %v1667_v4  ;;  %544 = vmatpush.bf16.msra.mxu1 %v1669_v5  ;;  %v1694_v26 = vld [vmem:[#allocation3] sm:$0xf]  ;;  %vm623_vm4 = vcmp.lt.s32.totalorder %v622_v29, %v1678_v7  ;;  %v428_v32 = vld [vmem:[%s324_s1] sm:$0xff]   ;;  %vm738_vm5 = vcmp.lt.s32.totalorder %v737_v31, %v1678_v7  ;;  %vm678_vm10 = vcmp.lt.s32.totalorder %v677_v51, %v1678_v7  ;;  %v680_v53 = vstv %s679_s18 }
  0x53   : > { %588 = vmatpush.bf16.msra.mxu2 %v1667_v4  ;;  %602 = vmatpush.bf16.msra.mxu3 %v1669_v5  ;;  %v631_v30 = vsel %vm623_vm4, 1, %v1455_v3  ;;  %v941_v33 = vld [vmem:[%s334_s16 + $0x8] sm:$0xff]   ;;  %v429_v35 = vunpack.c.l.bf16 %v428_v32  ;;  %v746_v37 = vsel %vm738_vm5, 1, %v1455_v3  ;;  %v682_v52 = vsel %vm678_vm10, 1, %v1455_v3 }
  0x54   : > { %626 = vperm.xlu1 %1160, %v624_v28   ;;  %v432_v36 = vunpack.c.h.bf16 %v941_v33  ;;  %684 = vperm.xlu2 %1161, %v682_v52   ;;  %vm681_vm11 = vcmp.lt.s32.totalorder %v680_v53, %v1678_v7  ;;  %v583_v55 = vunpack.c.h.bf16 %v428_v32  ;;  %v586_v57 = vunpack.c.l.bf16 %v941_v33  ;;  %v1008_v7 = vld [vmem:[%s324_s1 + $0x8] sm:$0xff]  }
  0x55   : > { %v689_v54 = vsel %vm681_vm11, 1, %v1455_v3  ;;  %v641_v10 = vunpack.c.l.bf16 %v1008_v7 }
  0x56   : > { %483 = vmatpush.bf16.msra.mxu0 %v1025_v8  ;;  %545 = vmatpush.bf16.msra.mxu1 %v1033_v9 }
  0x57   : > { %589 = vmatpush.bf16.msra.mxu2 %v1025_v8  ;;  %603 = vmatpush.bf16.msra.mxu3 %v1033_v9 }
  0x59   : > { %575 = vperm.xlu0 %1159, %v573_v14  }
  0x5a   : > { %484 = vmatpush.bf16.msra.mxu0 %v1024_v12  ;;  %546 = vmatpush.bf16.msra.mxu1 %v1032_v13 }
  0x5b   : > { %590 = vmatpush.bf16.msra.mxu2 %v1024_v12  ;;  %604 = vmatpush.bf16.msra.mxu3 %v1032_v13 }
  0x5c   : > { %633 = vperm.xlu1 %1160, %v631_v30   ;;  %691 = vperm.xlu2 %1161, %v689_v54  }
  0x5e   : > { %485 = vmatpush.bf16.msra.mxu0 %v1023_v15  ;;  %547 = vmatpush.bf16.msra.mxu1 %v1031_v16 }
  0x5f   : > { %591 = vmatpush.bf16.msra.mxu2 %v1023_v15  ;;  %605 = vmatpush.bf16.msra.mxu3 %v1031_v16 }
  0x61   : > { %741 = vperm.xlu0 %1159, %v739_v20  }
  0x62   : > { %486 = vmatpush.bf16.msra.mxu0 %v1022_v18  ;;  %548 = vmatpush.bf16.msra.mxu1 %v1030_v19 }
  0x63   : > { %592 = vmatpush.bf16.msra.mxu2 %v1022_v18  ;;  %606 = vmatpush.bf16.msra.mxu3 %v1030_v19 }
  0x64   : > { %748 = vperm.xlu1 %1160, %v746_v37  }
  0x66   : > { %487 = vmatpush.bf16.msra.mxu0 %v1021_v21  ;;  %549 = vmatpush.bf16.msra.mxu1 %v1029_v22 }
  0x67   : > { %593 = vmatpush.bf16.msra.mxu2 %v1021_v21  ;;  %607 = vmatpush.bf16.msra.mxu3 %v1029_v22 }
  0x6a   : > { %488 = vmatpush.bf16.msra.mxu0 %v1020_v23  ;;  %550 = vmatpush.bf16.msra.mxu1 %v1028_v24 }
  0x6b   : > { %594 = vmatpush.bf16.msra.mxu2 %v1020_v23  ;;  %608 = vmatpush.bf16.msra.mxu3 %v1028_v24 }
  0x6d   : > { %489 = vmatmul.bf16.vlgmr.msra.gmra.mxu0 %v1692_v25  ;;  %551 = vmatmul.bf16.vlgmr.msra.gmra.mxu1 %v1694_v26 }
  0x6e   : > { %645 = vmatpush.bf16.msrb.mxu0 %v1656_v1  ;;  %659 = vmatpush.bf16.msrb.mxu1 %v1658_v2 }
  0x6f   : > { %702 = vmatpush.bf16.msrb.mxu2 %v1656_v1  ;;  %716 = vmatpush.bf16.msrb.mxu3 %v1658_v2 }
  0x72   : > { %646 = vmatpush.bf16.msrb.mxu0 %v1667_v4  ;;  %660 = vmatpush.bf16.msrb.mxu1 %v1669_v5 }
  0x73   : > { %703 = vmatpush.bf16.msrb.mxu2 %v1667_v4  ;;  %717 = vmatpush.bf16.msrb.mxu3 %v1669_v5 }
  0x76   : > { %647 = vmatpush.bf16.msrb.mxu0 %v1025_v8  ;;  %661 = vmatpush.bf16.msrb.mxu1 %v1033_v9 }
  0x77   : > { %704 = vmatpush.bf16.msrb.mxu2 %v1025_v8  ;;  %718 = vmatpush.bf16.msrb.mxu3 %v1033_v9  ;;  %v1009_v8 = vld [vmem:[%s334_s16] sm:$0xff]  }
  0x78   : > { %v644_v11 = vunpack.c.h.bf16 %v1009_v8 }
  0x7a   : > { %648 = vmatpush.bf16.msrb.mxu0 %v1024_v12  ;;  %662 = vmatpush.bf16.msrb.mxu1 %v1032_v13 }
  0x7b   : > { %705 = vmatpush.bf16.msrb.mxu2 %v1024_v12  ;;  %719 = vmatpush.bf16.msrb.mxu3 %v1032_v13 }
  0x7e   : > { %649 = vmatpush.bf16.msrb.mxu0 %v1023_v15  ;;  %663 = vmatpush.bf16.msrb.mxu1 %v1031_v16 }
  0x7f   : > { %706 = vmatpush.bf16.msrb.mxu2 %v1023_v15  ;;  %720 = vmatpush.bf16.msrb.mxu3 %v1031_v16 }
  0x82   : > { %650 = vmatpush.bf16.msrb.mxu0 %v1022_v18  ;;  %664 = vmatpush.bf16.msrb.mxu1 %v1030_v19 }
  0x83   : > { %707 = vmatpush.bf16.msrb.mxu2 %v1022_v18  ;;  %721 = vmatpush.bf16.msrb.mxu3 %v1030_v19 }
  0x86   : > { %651 = vmatpush.bf16.msrb.mxu0 %v1021_v21  ;;  %665 = vmatpush.bf16.msrb.mxu1 %v1029_v22 }
  0x87   : > { %708 = vmatpush.bf16.msrb.mxu2 %v1021_v21  ;;  %722 = vmatpush.bf16.msrb.mxu3 %v1029_v22 }
  0x8a   : > { %652 = vmatpush.bf16.msrb.mxu0 %v1020_v23  ;;  %666 = vmatpush.bf16.msrb.mxu1 %v1028_v24 }
  0x8b   : > { %709 = vmatpush.bf16.msrb.mxu2 %v1020_v23  ;;  %723 = vmatpush.bf16.msrb.mxu3 %v1028_v24 }
  0xae   : > { %v685_v9 = vpop.permute.xlu2 %684 }
  0xaf   : > { %vm686_vm0 = vcmp.eq.s32.totalorder %v685_v9, 1 }
  0xb0   : > { %vm687_vm2 = vmpackc.low %vm686_vm0, %vm686_vm0 }
  0xb6   : > { %v692_v16 = vpop.permute.xlu2 %691 }
  0xb7   : > { %vm693_vm1 = vcmp.eq.s32.totalorder %v692_v16, 1 }
  0xb8   : > { %vm694_vm3 = vmpackc.low %vm693_vm1, %vm693_vm1 }
  0xc3   : > { %v569_v34 = vpop.permute.xlu0 %568 }
  0xc4   : > { %vm570_vm6 = vcmp.eq.s32.totalorder %v569_v34, 1 }
  0xc5   : > { %vm571_vm8 = vmpackc.low %vm570_vm6, %vm570_vm6 }
  0xc6   : > { %v627_v56 = vpop.permute.xlu1 %626 }
  0xc7   : > { %vm628_vm12 = vcmp.eq.s32.totalorder %v627_v56, 1 }
  0xc8   : > { %vm629_vm14 = vmpackc.low %vm628_vm12, %vm628_vm12 }
  0xcb   : > { %v576_v42 = vpop.permute.xlu0 %575 }
  0xcc   : > { %vm577_vm7 = vcmp.eq.s32.totalorder %v576_v42, 1 }
  0xcd   : > { %vm578_vm9 = vmpackc.low %vm577_vm7, %vm577_vm7 }
  0xce   : > { %v634_v62 = vpop.permute.xlu1 %633 }
  0xcf   : > { %vm635_vm13 = vcmp.eq.s32.totalorder %v634_v62, 1 }
  0xd0   : > { %vm636_vm15 = vmpackc.low %vm635_vm13, %vm635_vm13 }
  0xd3   : > { %v742_v31 = vpop.permute.xlu0 %741 }
  0xd4   : > { %vm743_vm4 = vcmp.eq.s32.totalorder %v742_v31, 1 }
  0xd5   : > { %vm744_vm6 = vmpackc.low %vm743_vm4, %vm743_vm4 }
  0xd6   : > { %v749_v32 = vpop.permute.xlu1 %748 }
  0xd7   : > { %vm750_vm5 = vcmp.eq.s32.totalorder %v749_v32, 1 }
  0xd8   : > { %vm751_vm7 = vmpackc.low %vm750_vm5, %vm750_vm5 }
  0xea   : > { %v490_v38 = vpop.f32.mrf.mxu0  ;;  %v552_v39 = vpop.f32.mrf.mxu1 }
  0xeb   : > { %v494_v40 = vadd.f32 %v490_v38, %v429_v35  ;;  %v556_v41 = vadd.f32 %v552_v39, %v432_v36 }
  0xed   : > { %1162 = vtanh.f32 %v494_v40 }
  0xee   : > { %1164 = vtanh.f32 %v556_v41 }
  0xf2   : > { %v492_v43 = vpop.f32.mrf.mxu0  ;;  %v554_v44 = vpop.f32.mrf.mxu1 }
  0xf3   : > { %v1163_v45 = vpop.eup %1162 }
  0xf4   : > { %v1165_v46 = vpop.eup %1164  ;;  %v558_v47 = vpack.c.bf16 %v1163_v45, %v1163_v45 }
  0xf5   : > { %v560_v48 = vpack.c.bf16 %v1165_v46, %v1165_v46 }
  0xf6   : > { %v572_v49 = vsel %vm571_vm8, %v558_v47, %v1692_v25  ;;  %v699_v25 = vunpack.c.h.bf16 %v1008_v7 }
  0xf7   : > { %595 = vmatmul.bf16.vlgmr.msra.gmra.mxu2 %v572_v49  ;;  %v579_v50 = vsel %vm578_vm9, %v560_v48, %v1694_v26  ;;  %v701_v26 = vunpack.c.l.bf16 %v1009_v8 }
  0xf8   : > { %609 = vmatmul.bf16.vlgmr.msra.gmra.mxu3 %v579_v50 }
 0x17a   : > { %v596_v58 = vpop.f32.mrf.mxu2 }
 0x17b   : > { %v600_v59 = vadd.f32 %v596_v58, %v583_v55  ;;  %v610_v60 = vpop.f32.mrf.mxu3 }
 0x17c   : > { %v614_v61 = vadd.f32 %v610_v60, %v586_v57 }
 0x17d   : > { %1166 = vtanh.f32 %v600_v59 }
 0x17e   : > { %1168 = vtanh.f32 %v614_v61 }
 0x182   : > { %v598_v63 = vpop.f32.mrf.mxu2 }
 0x183   : > { %v1167_v0 = vpop.eup %1166  ;;  %v612_v1 = vpop.f32.mrf.mxu3 }
 0x184   : > { %v1169_v2 = vpop.eup %1168  ;;  %v616_v3 = vpack.c.bf16 %v1167_v0, %v1167_v0 }
 0x185   : > { %v618_v4 = vpack.c.bf16 %v1169_v2, %v1169_v2 }
 0x186   : > { %v630_v5 = vsel %vm629_vm14, %v616_v3, %v572_v49 }
 0x187   : > { %653 = vmatmul.bf16.vlgmr.msrb.gmra.mxu0 %v630_v5  ;;  %v637_v6 = vsel %vm636_vm15, %v618_v4, %v579_v50 }
 0x188   : > { %667 = vmatmul.bf16.vlgmr.msrb.gmra.mxu1 %v637_v6 }
 0x204   : > { %v654_v12 = vpop.f32.mrf.mxu0 }
 0x205   : > { %v658_v13 = vadd.f32 %v654_v12, %v641_v10  ;;  %v668_v14 = vpop.f32.mrf.mxu1 }
 0x206   : > { %v672_v15 = vadd.f32 %v668_v14, %v644_v11 }
 0x207   : > { %1170 = vtanh.f32 %v658_v13 }
 0x208   : > { %1172 = vtanh.f32 %v672_v15 }
 0x20c   : > { %v656_v17 = vpop.f32.mrf.mxu0 }
 0x20d   : > { %v1171_v18 = vpop.eup %1170  ;;  %v670_v19 = vpop.f32.mrf.mxu1 }
 0x20e   : > { %v1173_v20 = vpop.eup %1172  ;;  %v674_v21 = vpack.c.bf16 %v1171_v18, %v1171_v18 }
 0x20f   : > { %v676_v22 = vpack.c.bf16 %v1173_v20, %v1173_v20 }
 0x210   : > { %v688_v23 = vsel %vm687_vm2, %v674_v21, %v630_v5 }
 0x211   : > { %710 = vmatmul.bf16.vlgmr.msrb.gmra.mxu2 %v688_v23  ;;  %v695_v24 = vsel %vm694_vm3, %v676_v22, %v637_v6 }
 0x212   : > { %724 = vmatmul.bf16.vlgmr.msrb.gmra.mxu3 %v695_v24 }
 0x294   : > { %v711_v27 = vpop.f32.mrf.mxu2 }
 0x295   : > { %v715_v28 = vadd.f32 %v711_v27, %v699_v25  ;;  %v725_v29 = vpop.f32.mrf.mxu3 }
 0x296   : > { %v729_v30 = vadd.f32 %v725_v29, %v701_v26 }
 0x297   : > { %1174 = vtanh.f32 %v715_v28 }
 0x298   : > { %1176 = vtanh.f32 %v729_v30 }
 0x29c   : > { %v713_v33 = vpop.f32.mrf.mxu2 }
 0x29d   : > { %v1175_v34 = vpop.eup %1174  ;;  %v727_v35 = vpop.f32.mrf.mxu3 }
 0x29e   : > { %v1177_v36 = vpop.eup %1176  ;;  %v731_v37 = vpack.c.bf16 %v1175_v34, %v1175_v34  ;;  %758 = sbr.rel (%p1011_p1) target bundleno = 677 (0x2a5), region = 64 }
 0x29f   : > { %v733_v38 = vpack.c.bf16 %v1177_v36, %v1177_v36 }
 0x2a0   : > { %v745_v39 = vsel %vm744_vm6, %v731_v37, %v688_v23 }
 0x2a1   : > { %753 = vst [vmem:[#allocation2] sm:$0xf] %v745_v39  ;;  %v752_v40 = vsel %vm751_vm7, %v733_v38, %v695_v24 }
 0x2a2   : > { %754 = vst [vmem:[#allocation3] sm:$0xf] %v752_v40 }
 0x2a3   : > { %759 = vst [vmem:[#allocation12] sm:$0xf] %v745_v39 }
 0x2a4   : > { %760 = vst [vmem:[#allocation13] sm:$0xf] %v752_v40 }
 0x2a5 PF: > { %p1075_p4 = scmp.eq.s32.totalorder %s1537_s30, 1  ;;  %s771_s28 = sshll.u32 %s1783_s5, 4  ;;  %s772_s28 = int_to_ptr.hbm [resolvable:$true] %s771_s28 }
 0x2a6   : > { %s1456_s26 = smov [#allocation12]   ;;  %s1457_s27 = smov [#allocation13]  }
 0x2a7   : > { %s769_s1 = sshll.u32 %s1456_s26, 4  ;;  %s783_s4 = sshll.u32 %s1457_s27, 4  ;;  %s770_s1 = int_to_ptr.vmem [resolvable:$true] %s769_s1  ;;  %s784_s4 = int_to_ptr.vmem [resolvable:$true] %s783_s4 }
 0x2a8   : > { %1049 = dma.vmem_to_hbm [thread:$0]  (%p1075_p4), %s770_s1, 64, %s772_s28, [#allocation6]  }
 0x2a9   : > { %s1807_s14 = sld [smem:[#allocation27_spill]] }
 0x2af   : > { %s785_s16 = sshll.u32 %s1807_s14, 4  ;;  %s786_s16 = int_to_ptr.hbm [resolvable:$true] %s785_s16 }
 0x2b0   : > { %1051 = dma.vmem_to_hbm [thread:$0]  (%p1075_p4), %s784_s4, 64, %s786_s16, [#allocation14]  }
 0x2b1   : > { %1407 = dma.done.wait (%p1075_p4), [#allocation6], 64  }
 0x2b2   : > { %1409 = vsyncadd (%p1075_p4), [#allocation6], 4294967232 }
 0x2b3   : > { %1411 = dma.done.wait (%p1075_p4), [#allocation14], 64  }
 0x2b4   : > { %1413 = vsyncadd (%p1075_p4), [#allocation14], 4294967232 }
 0x2b5 PF: > { %s26_s29 = sadd.s32 1, %s1448_s29   ;;  %s1808_s7 = sld [smem:[#allocation21_spill]] }
 0x2b6   : > { %p23_p10 = scmp.ge.s32.totalorder %s26_s29, 4   ;;  %s1809_s26 = sld [smem:[#allocation23_spill]] }
 0x2b7   : > { %s1810_s27 = sld [smem:[#allocation22_spill]]  ;;  %s1811_s10 = smov %s1819_s21 }
 0x2b8   : > { %s1812_s21 = smov %s1420_s22  ;;  %s1813_s22 = smov %s1424_s23 }
 0x2b9   : > { %s1814_s23 = smov %s1617_s13  ;;  %s1815_s24 = smov %s1432_s25 }
 0x2ba   : > { %s1817_s28 = smov %s1811_s10  ;;  %25 = sbr.rel (!%p23_p10) target bundleno = 16 (0x10), region = 125 }
 0x2bb   : > { %s1816_s25 = smov %s1808_s7 }
 0x2bf   :  { %804 = vsyncpa [#allocation5], 1 }
 0x2c0   :  { %806 = vsyncpa [#allocation5 + $0x1], 1 }
 0x2c1   :  { %807 = vsyncpa [#allocation8], 1 }
 0x2c2   :  { %809 = vsyncpa [#allocation8 + $0x1], 1 }
 0x2c3   :  { %810 = vsyncpa [#allocation11], 1 }
 0x2c4   :  { %811 = vsyncpa [#allocation6], 1 }
 0x2c5   :  { %813 = vsyncpa [#allocation6 + $0x1], 1 }
 0x2c6   :  { %814 = vsyncpa [#allocation14], 1 }

</bundles_post_ra>
